<compile_context>
chip_gen: v7x
topology: tpu7x:2x2x1
jax: 0.10.0
libtpu: 0.0.40
codegen_flags: <defaults>
</compile_context>

<pallas_src>
import math

import jax
import jax.numpy as jnp
from jax.experimental import pallas as pl
from jax.experimental.pallas import tpu as pltpu

_FC_LANES = 128  # lane-dense padding width for the (H, 1) fc head


def _lstm_fc_kernel(x_ref, w_in_ref, b_in_ref, w_rec_ref, fc_w_ref, fc_b_ref,
                    out_ref):
    """Whole forward pass in one kernel invocation (no grid).

    x_ref     : (T*BP, D) bf16  time-major rows (row t*BP + b == x[b, t, :])
    w_in_ref  : (D, 8H)   bf16  layer-0 input proj, joint-interleaved columns
                                [i0 i1 f0 f1 g0 g1 o0 o1]; layer-1 cols are 0
    b_in_ref  : (1, 8H)   f32   joint bias (b0 in layer-0 cols, b1 in layer-1)
    w_rec_ref : (2H, 8H)  bf16  fused recurrent weight [[W_hh0,W_ih1],[0,W_hh1]]
    fc_w_ref  : (2H, 128) bf16  rows 0:H zero, rows H:2H col 0 = fc weight
    fc_b_ref  : (1, 128)  f32
    out_ref   : (BP, 128) f32   (rows 0:B, column 0 hold the predictions)
    """
    BP = out_ref.shape[0]
    T = x_ref.shape[0] // BP
    G = w_rec_ref.shape[0]          # 2*H  (joint state width: [h0 | h1])
    H = G // 2

    # Weights / biases loaded from VMEM exactly once.
    w_in = w_in_ref[...]
    b_in = b_in_ref[...]
    w_rec = w_rec_ref[...]

    # Non-recurrent input projection (+ both layers' biases) for ALL timesteps
    # in one MXU issue, off the serial chain.  Layer-1 columns are pure b1.
    xg = (jnp.dot(x_ref[...], w_in, preferred_element_type=jnp.float32)
          + b_in)                                           # (T*BP, 8H) f32

    # Mask selecting the layer-0 half of the joint state (used once, wave 0).
    l0_mask = jax.lax.broadcasted_iota(jnp.int32, (BP, G), 1) < H

    # Joint recurrent state lives in vregs: h = [h0 | h1] bf16, c = [c0 | c1] f32.
    h = jnp.zeros((BP, G), jnp.bfloat16)
    c = jnp.zeros((BP, G), jnp.float32)

    def joint_update(gj, c_prev):
        # One sigmoid + one tanh over the joint (BP, 8H) gate row for BOTH
        # layers, then per-gate slices (layout [i0 i1 f0 f1 g0 g1 o0 o1]).
        sig = jax.nn.sigmoid(gj)
        th = jnp.tanh(gj)
        i = sig[:, 0 * G:1 * G]
        f = sig[:, 1 * G:2 * G]
        g = th[:, 2 * G:3 * G]
        o = sig[:, 3 * G:4 * G]
        c_new = f * c_prev + i * g
        h_new = (o * jnp.tanh(c_new)).astype(jnp.bfloat16)   # bf16 carry
        return h_new, c_new

    # T+1 skewed waves (fully unrolled, T static): wave w = layer-0 step w and
    # layer-1 step w-1.  Wave 0 has no recurrent contribution (h == 0) so the
    # matmul is skipped; wave T reuses the last xg row — its layer-0 half is
    # spurious and discarded (fc weight is zero over the h0 lanes).
    for w in range(T + 1):
        row = min(w, T - 1) * BP
        xrow = xg[row:row + BP, :]
        if w == 0:
            gj = xrow
        else:
            gj = xrow + jnp.dot(h, w_rec, preferred_element_type=jnp.float32)
        h, c = joint_update(gj, c)
        if w == 0:
            # Layer-1 has not started yet: zero its spurious half of the state.
            h = jnp.where(l0_mask, h, jnp.zeros_like(h))
            c = jnp.where(l0_mask, c, jnp.zeros_like(c))

    # fc head: contracting the full [h0 | h1] carry against the zero-padded fc
    # weight picks out h1(T-1); lane-dense 128-wide unmasked store.
    out_ref[...] = (jnp.dot(h, fc_w_ref[...],
                            preferred_element_type=jnp.float32)
                    + fc_b_ref[...])


def prepare_params(params):
    """One-time weight packing (bf16 casts, fusion, padding) — review #10."""
    H = params["w_hh0"].shape[0]
    D = params["w_ih0"].shape[0]

    def interleave(l0, l1):
        # (R, 4H) x2 -> (R, 8H) with columns [i0 i1 f0 f1 g0 g1 o0 o1].
        R = l0.shape[0]
        return jnp.stack([l0.reshape(R, 4, H), l1.reshape(R, 4, H)],
                         axis=2).reshape(R, 8 * H)

    z_d = jnp.zeros((D, 4 * H), jnp.float32)
    z_h = jnp.zeros((H, 4 * H), jnp.float32)

    w_in = interleave(params["w_ih0"], z_d).astype(jnp.bfloat16)    # (D, 8H)
    b_in = interleave(params["b0"], params["b1"])                   # (1, 8H) f32
    w_rec = jnp.concatenate(
        [interleave(params["w_hh0"], params["w_ih1"]),              # h0 rows
         interleave(z_h, params["w_hh1"])],                         # h1 rows
        axis=0).astype(jnp.bfloat16)                                # (2H, 8H)
    fc_w = jnp.concatenate(
        [jnp.zeros((H, 1), jnp.float32), params["fc_w"]], axis=0)   # (2H, 1)
    fc_w = jnp.pad(fc_w, ((0, 0), (0, _FC_LANES - 1))).astype(jnp.bfloat16)
    fc_b = jnp.pad(params["fc_b"], ((0, 0), (0, _FC_LANES - 1)))    # (1, 128)

    return {"w_in": w_in, "b_in": b_in, "w_rec": w_rec,
            "fc_w": fc_w, "fc_b": fc_b}


def price_lstm_forward(x, packed):
    """x: (B, T, D) float32 -> (B, 1) float32."""
    B, T, D = x.shape
    BP = ((B + 7) // 8) * 8   # pad batch to 8 sublanes (review #11)

    xp = jnp.pad(x, ((0, BP - B), (0, 0), (0, 0)))
    # Time-major & flattened so the layer-0 input projection is one matmul;
    # each timestep's BP rows are sublane-aligned.
    x2d = (jnp.transpose(xp, (1, 0, 2))
           .reshape(T * BP, D)
           .astype(jnp.bfloat16))

    vmem = pl.BlockSpec(memory_space=pltpu.MemorySpace.VMEM)

    out = pl.pallas_call(
        _lstm_fc_kernel,
        out_shape=jax.ShapeDtypeStruct((BP, _FC_LANES), jnp.float32),
        in_specs=[vmem] * 6,
        out_specs=vmem,
    )(x2d, packed["w_in"], packed["b_in"], packed["w_rec"],
      packed["fc_w"], packed["fc_b"])
    return out[:B, :1]


def init_params(key, input_dim, hidden_dim):
    """Deterministic synthetic parameters (shapes match nn.LSTM + nn.Linear)."""
    H = hidden_dim
    scale = 1.0 / math.sqrt(H)
    ks = jax.random.split(key, 12)

    def u(k, shape):
        return jax.random.uniform(k, shape, jnp.float32, -scale, scale)

    # Stored already transposed to (in_features, 4H), gate order [i, f, g, o].
    params = {
        "w_ih0": u(ks[0], (input_dim, 4 * H)),
        "w_hh0": u(ks[1], (H, 4 * H)),
        "b0":    u(ks[2], (1, 4 * H)) + u(ks[3], (1, 4 * H)),   # b_ih + b_hh
        "w_ih1": u(ks[4], (H, 4 * H)),
        "w_hh1": u(ks[5], (H, 4 * H)),
        "b1":    u(ks[6], (1, 4 * H)) + u(ks[7], (1, 4 * H)),
        "fc_w":  u(ks[8], (H, 1)),
        "fc_b":  u(ks[9], (1, 1)),
    }
    return params


def ref_forward(x, params):
    """Pure-JAX f32 reference of the same math (for correctness checking)."""
    B, T, _ = x.shape
    H = params["w_hh0"].shape[0]
    h0 = jnp.zeros((B, H), jnp.float32)
    c0 = jnp.zeros((B, H), jnp.float32)
    h1 = jnp.zeros((B, H), jnp.float32)
    c1 = jnp.zeros((B, H), jnp.float32)

    def cell(x_in, h_prev, c_prev, w_ih, w_hh, b):
        gates = x_in @ w_ih + h_prev @ w_hh + b
        i = jax.nn.sigmoid(gates[:, 0 * H:1 * H])
        f = jax.nn.sigmoid(gates[:, 1 * H:2 * H])
        g = jnp.tanh(gates[:, 2 * H:3 * H])
        o = jax.nn.sigmoid(gates[:, 3 * H:4 * H])
        c_new = f * c_prev + i * g
        return o * jnp.tanh(c_new), c_new

    for t in range(T):
        h0, c0 = cell(x[:, t, :], h0, c0,
                      params["w_ih0"], params["w_hh0"], params["b0"])
        h1, c1 = cell(h0, h1, c1,
                      params["w_ih1"], params["w_hh1"], params["b1"])
    return h1 @ params["fc_w"] + params["fc_b"]


if __name__ == "__main__":
    B, T, D, H = 2, 8, 4, 32   # batch, seq_len, input_dim, hidden_dim

    key = jax.random.PRNGKey(0)
    k_x, k_p = jax.random.split(key)
    x = jax.random.normal(k_x, (B, T, D), dtype=jnp.float32)
    params = init_params(k_p, D, H)

    packed = prepare_params(params)          # one-time weight packing
    fwd = jax.jit(price_lstm_forward)
    out = fwd(x, packed)
    out = jax.block_until_ready(out)

    ref = ref_forward(x, params)
    assert out.shape == (B, 1)
    # Tolerance reflects bf16 MXU inputs (f32 accumulation); error is O(1e-3)
    # at these shapes.
    assert jnp.allclose(out, ref, atol=2e-2, rtol=2e-2), (out, ref)

    print("KERNEL_OK")
</pallas_src>

<mosaic_0001>
module attributes {stable_mosaic.version = 11 : i64} {
  func.func @_lstm_fc_kernel(%arg0: memref<64x4xbf16, #tpu.memory_space<vmem>>, %arg1: memref<4x256xbf16, #tpu.memory_space<vmem>>, %arg2: memref<1x256xf32, #tpu.memory_space<vmem>>, %arg3: memref<64x256xbf16, #tpu.memory_space<vmem>>, %arg4: memref<64x128xbf16, #tpu.memory_space<vmem>>, %arg5: memref<1x128xf32, #tpu.memory_space<vmem>>, %arg6: memref<8x128xf32, #tpu.memory_space<vmem>>) attributes {dimension_semantics = [], scalar_prefetch = 0 : i64, scratch_operands = 0 : i64, tpu.core_type = #tpu.core_type<tc>} {
    %c0 = arith.constant 0 : index
    %c0_0 = arith.constant 0 : index
    %0 = vector.load %arg1[%c0, %c0_0] : memref<4x256xbf16, #tpu.memory_space<vmem>>, vector<4x256xbf16>
    %c0_1 = arith.constant 0 : index
    %c0_2 = arith.constant 0 : index
    %1 = vector.load %arg2[%c0_1, %c0_2] : memref<1x256xf32, #tpu.memory_space<vmem>>, vector<1x256xf32>
    %c0_3 = arith.constant 0 : index
    %c0_4 = arith.constant 0 : index
    %2 = vector.load %arg3[%c0_3, %c0_4] : memref<64x256xbf16, #tpu.memory_space<vmem>>, vector<64x256xbf16>
    %c0_5 = arith.constant 0 : index
    %c0_6 = arith.constant 0 : index
    %3 = vector.load %arg0[%c0_5, %c0_6] : memref<64x4xbf16, #tpu.memory_space<vmem>>, vector<64x4xbf16>
    %cst = arith.constant dense<0.000000e+00> : vector<64x256xf32>
    %4 = tpu.matmul %3, %0, %cst {dimension_numbers = #tpu.dot_dimension_numbers<[1], [0], [0], [1], [0, 0, 1, 1], [], []>} : vector<64x4xbf16>, vector<4x256xbf16>, vector<64x256xf32> -> vector<64x256xf32>
    %5 = vector.broadcast %1 : vector<1x256xf32> to vector<64x256xf32>
    %6 = arith.addf %4, %5 : vector<64x256xf32>
    %7 = tpu.iota {dimensions = array<i32: 1>} : vector<8x64xi32>
    %c32_i32 = arith.constant 32 : i32
    %8 = vector.broadcast %c32_i32 : i32 to vector<8x64xi32>
    %9 = arith.cmpi slt, %7, %8 : vector<8x64xi32>
    %cst_7 = arith.constant 0.000000e+00 : f32
    %10 = vector.broadcast %cst_7 : f32 to vector<8x64xf32>
    %11 = vector.extract_strided_slice %6 {offsets = [0, 0], sizes = [8, 256], strides = [1, 1]} : vector<64x256xf32> to vector<8x256xf32>
    %12 = arith.negf %11 : vector<8x256xf32>
    %13 = math.exp %12 : vector<8x256xf32>
    %cst_8 = arith.constant 1.000000e+00 : f32
    %14 = vector.broadcast %cst_8 : f32 to vector<8x256xf32>
    %15 = arith.addf %14, %13 : vector<8x256xf32>
    %16 = arith.divf %14, %15 : vector<8x256xf32>
    %17 = math.tanh %11 : vector<8x256xf32>
    %18 = vector.extract_strided_slice %16 {offsets = [0, 0], sizes = [8, 64], strides = [1, 1]} : vector<8x256xf32> to vector<8x64xf32>
    %19 = vector.extract_strided_slice %16 {offsets = [0, 64], sizes = [8, 64], strides = [1, 1]} : vector<8x256xf32> to vector<8x64xf32>
    %20 = vector.extract_strided_slice %17 {offsets = [0, 128], sizes = [8, 64], strides = [1, 1]} : vector<8x256xf32> to vector<8x64xf32>
    %21 = vector.extract_strided_slice %16 {offsets = [0, 192], sizes = [8, 64], strides = [1, 1]} : vector<8x256xf32> to vector<8x64xf32>
    %22 = arith.mulf %19, %10 : vector<8x64xf32>
    %23 = arith.mulf %18, %20 : vector<8x64xf32>
    %24 = arith.addf %22, %23 : vector<8x64xf32>
    %25 = math.tanh %24 : vector<8x64xf32>
    %26 = arith.mulf %21, %25 : vector<8x64xf32>
    %27 = arith.truncf %26 : vector<8x64xf32> to vector<8x64xbf16>
    %cst_9 = arith.constant 0.000000e+00 : bf16
    %28 = vector.broadcast %cst_9 : bf16 to vector<8x64xbf16>
    %29 = arith.select %9, %27, %28 : vector<8x64xi1>, vector<8x64xbf16>
    %cst_10 = arith.constant 0.000000e+00 : f32
    %30 = vector.broadcast %cst_10 : f32 to vector<8x64xf32>
    %31 = arith.select %9, %24, %30 : vector<8x64xi1>, vector<8x64xf32>
    %32 = vector.extract_strided_slice %6 {offsets = [8, 0], sizes = [8, 256], strides = [1, 1]} : vector<64x256xf32> to vector<8x256xf32>
    %cst_11 = arith.constant dense<0.000000e+00> : vector<8x256xf32>
    %33 = tpu.matmul %29, %2, %cst_11 {dimension_numbers = #tpu.dot_dimension_numbers<[1], [0], [0], [1], [0, 0, 1, 1], [], []>} : vector<8x64xbf16>, vector<64x256xbf16>, vector<8x256xf32> -> vector<8x256xf32>
    %34 = arith.addf %32, %33 : vector<8x256xf32>
    %35 = arith.negf %34 : vector<8x256xf32>
    %36 = math.exp %35 : vector<8x256xf32>
    %cst_12 = arith.constant 1.000000e+00 : f32
    %37 = vector.broadcast %cst_12 : f32 to vector<8x256xf32>
    %38 = arith.addf %37, %36 : vector<8x256xf32>
    %39 = arith.divf %37, %38 : vector<8x256xf32>
    %40 = math.tanh %34 : vector<8x256xf32>
    %41 = vector.extract_strided_slice %39 {offsets = [0, 0], sizes = [8, 64], strides = [1, 1]} : vector<8x256xf32> to vector<8x64xf32>
    %42 = vector.extract_strided_slice %39 {offsets = [0, 64], sizes = [8, 64], strides = [1, 1]} : vector<8x256xf32> to vector<8x64xf32>
    %43 = vector.extract_strided_slice %40 {offsets = [0, 128], sizes = [8, 64], strides = [1, 1]} : vector<8x256xf32> to vector<8x64xf32>
    %44 = vector.extract_strided_slice %39 {offsets = [0, 192], sizes = [8, 64], strides = [1, 1]} : vector<8x256xf32> to vector<8x64xf32>
    %45 = arith.mulf %42, %31 : vector<8x64xf32>
    %46 = arith.mulf %41, %43 : vector<8x64xf32>
    %47 = arith.addf %45, %46 : vector<8x64xf32>
    %48 = math.tanh %47 : vector<8x64xf32>
    %49 = arith.mulf %44, %48 : vector<8x64xf32>
    %50 = arith.truncf %49 : vector<8x64xf32> to vector<8x64xbf16>
    %51 = vector.extract_strided_slice %6 {offsets = [16, 0], sizes = [8, 256], strides = [1, 1]} : vector<64x256xf32> to vector<8x256xf32>
    %cst_13 = arith.constant dense<0.000000e+00> : vector<8x256xf32>
    %52 = tpu.matmul %50, %2, %cst_13 {dimension_numbers = #tpu.dot_dimension_numbers<[1], [0], [0], [1], [0, 0, 1, 1], [], []>} : vector<8x64xbf16>, vector<64x256xbf16>, vector<8x256xf32> -> vector<8x256xf32>
    %53 = arith.addf %51, %52 : vector<8x256xf32>
    %54 = arith.negf %53 : vector<8x256xf32>
    %55 = math.exp %54 : vector<8x256xf32>
    %cst_14 = arith.constant 1.000000e+00 : f32
    %56 = vector.broadcast %cst_14 : f32 to vector<8x256xf32>
    %57 = arith.addf %56, %55 : vector<8x256xf32>
    %58 = arith.divf %56, %57 : vector<8x256xf32>
    %59 = math.tanh %53 : vector<8x256xf32>
    %60 = vector.extract_strided_slice %58 {offsets = [0, 0], sizes = [8, 64], strides = [1, 1]} : vector<8x256xf32> to vector<8x64xf32>
    %61 = vector.extract_strided_slice %58 {offsets = [0, 64], sizes = [8, 64], strides = [1, 1]} : vector<8x256xf32> to vector<8x64xf32>
    %62 = vector.extract_strided_slice %59 {offsets = [0, 128], sizes = [8, 64], strides = [1, 1]} : vector<8x256xf32> to vector<8x64xf32>
    %63 = vector.extract_strided_slice %58 {offsets = [0, 192], sizes = [8, 64], strides = [1, 1]} : vector<8x256xf32> to vector<8x64xf32>
    %64 = arith.mulf %61, %47 : vector<8x64xf32>
    %65 = arith.mulf %60, %62 : vector<8x64xf32>
    %66 = arith.addf %64, %65 : vector<8x64xf32>
    %67 = math.tanh %66 : vector<8x64xf32>
    %68 = arith.mulf %63, %67 : vector<8x64xf32>
    %69 = arith.truncf %68 : vector<8x64xf32> to vector<8x64xbf16>
    %70 = vector.extract_strided_slice %6 {offsets = [24, 0], sizes = [8, 256], strides = [1, 1]} : vector<64x256xf32> to vector<8x256xf32>
    %cst_15 = arith.constant dense<0.000000e+00> : vector<8x256xf32>
    %71 = tpu.matmul %69, %2, %cst_15 {dimension_numbers = #tpu.dot_dimension_numbers<[1], [0], [0], [1], [0, 0, 1, 1], [], []>} : vector<8x64xbf16>, vector<64x256xbf16>, vector<8x256xf32> -> vector<8x256xf32>
    %72 = arith.addf %70, %71 : vector<8x256xf32>
    %73 = arith.negf %72 : vector<8x256xf32>
    %74 = math.exp %73 : vector<8x256xf32>
    %cst_16 = arith.constant 1.000000e+00 : f32
    %75 = vector.broadcast %cst_16 : f32 to vector<8x256xf32>
    %76 = arith.addf %75, %74 : vector<8x256xf32>
    %77 = arith.divf %75, %76 : vector<8x256xf32>
    %78 = math.tanh %72 : vector<8x256xf32>
    %79 = vector.extract_strided_slice %77 {offsets = [0, 0], sizes = [8, 64], strides = [1, 1]} : vector<8x256xf32> to vector<8x64xf32>
    %80 = vector.extract_strided_slice %77 {offsets = [0, 64], sizes = [8, 64], strides = [1, 1]} : vector<8x256xf32> to vector<8x64xf32>
    %81 = vector.extract_strided_slice %78 {offsets = [0, 128], sizes = [8, 64], strides = [1, 1]} : vector<8x256xf32> to vector<8x64xf32>
    %82 = vector.extract_strided_slice %77 {offsets = [0, 192], sizes = [8, 64], strides = [1, 1]} : vector<8x256xf32> to vector<8x64xf32>
    %83 = arith.mulf %80, %66 : vector<8x64xf32>
    %84 = arith.mulf %79, %81 : vector<8x64xf32>
    %85 = arith.addf %83, %84 : vector<8x64xf32>
    %86 = math.tanh %85 : vector<8x64xf32>
    %87 = arith.mulf %82, %86 : vector<8x64xf32>
    %88 = arith.truncf %87 : vector<8x64xf32> to vector<8x64xbf16>
    %89 = vector.extract_strided_slice %6 {offsets = [32, 0], sizes = [8, 256], strides = [1, 1]} : vector<64x256xf32> to vector<8x256xf32>
    %cst_17 = arith.constant dense<0.000000e+00> : vector<8x256xf32>
    %90 = tpu.matmul %88, %2, %cst_17 {dimension_numbers = #tpu.dot_dimension_numbers<[1], [0], [0], [1], [0, 0, 1, 1], [], []>} : vector<8x64xbf16>, vector<64x256xbf16>, vector<8x256xf32> -> vector<8x256xf32>
    %91 = arith.addf %89, %90 : vector<8x256xf32>
    %92 = arith.negf %91 : vector<8x256xf32>
    %93 = math.exp %92 : vector<8x256xf32>
    %cst_18 = arith.constant 1.000000e+00 : f32
    %94 = vector.broadcast %cst_18 : f32 to vector<8x256xf32>
    %95 = arith.addf %94, %93 : vector<8x256xf32>
    %96 = arith.divf %94, %95 : vector<8x256xf32>
    %97 = math.tanh %91 : vector<8x256xf32>
    %98 = vector.extract_strided_slice %96 {offsets = [0, 0], sizes = [8, 64], strides = [1, 1]} : vector<8x256xf32> to vector<8x64xf32>
    %99 = vector.extract_strided_slice %96 {offsets = [0, 64], sizes = [8, 64], strides = [1, 1]} : vector<8x256xf32> to vector<8x64xf32>
    %100 = vector.extract_strided_slice %97 {offsets = [0, 128], sizes = [8, 64], strides = [1, 1]} : vector<8x256xf32> to vector<8x64xf32>
    %101 = vector.extract_strided_slice %96 {offsets = [0, 192], sizes = [8, 64], strides = [1, 1]} : vector<8x256xf32> to vector<8x64xf32>
    %102 = arith.mulf %99, %85 : vector<8x64xf32>
    %103 = arith.mulf %98, %100 : vector<8x64xf32>
    %104 = arith.addf %102, %103 : vector<8x64xf32>
    %105 = math.tanh %104 : vector<8x64xf32>
    %106 = arith.mulf %101, %105 : vector<8x64xf32>
    %107 = arith.truncf %106 : vector<8x64xf32> to vector<8x64xbf16>
    %108 = vector.extract_strided_slice %6 {offsets = [40, 0], sizes = [8, 256], strides = [1, 1]} : vector<64x256xf32> to vector<8x256xf32>
    %cst_19 = arith.constant dense<0.000000e+00> : vector<8x256xf32>
    %109 = tpu.matmul %107, %2, %cst_19 {dimension_numbers = #tpu.dot_dimension_numbers<[1], [0], [0], [1], [0, 0, 1, 1], [], []>} : vector<8x64xbf16>, vector<64x256xbf16>, vector<8x256xf32> -> vector<8x256xf32>
    %110 = arith.addf %108, %109 : vector<8x256xf32>
    %111 = arith.negf %110 : vector<8x256xf32>
    %112 = math.exp %111 : vector<8x256xf32>
    %cst_20 = arith.constant 1.000000e+00 : f32
    %113 = vector.broadcast %cst_20 : f32 to vector<8x256xf32>
    %114 = arith.addf %113, %112 : vector<8x256xf32>
    %115 = arith.divf %113, %114 : vector<8x256xf32>
    %116 = math.tanh %110 : vector<8x256xf32>
    %117 = vector.extract_strided_slice %115 {offsets = [0, 0], sizes = [8, 64], strides = [1, 1]} : vector<8x256xf32> to vector<8x64xf32>
    %118 = vector.extract_strided_slice %115 {offsets = [0, 64], sizes = [8, 64], strides = [1, 1]} : vector<8x256xf32> to vector<8x64xf32>
    %119 = vector.extract_strided_slice %116 {offsets = [0, 128], sizes = [8, 64], strides = [1, 1]} : vector<8x256xf32> to vector<8x64xf32>
    %120 = vector.extract_strided_slice %115 {offsets = [0, 192], sizes = [8, 64], strides = [1, 1]} : vector<8x256xf32> to vector<8x64xf32>
    %121 = arith.mulf %118, %104 : vector<8x64xf32>
    %122 = arith.mulf %117, %119 : vector<8x64xf32>
    %123 = arith.addf %121, %122 : vector<8x64xf32>
    %124 = math.tanh %123 : vector<8x64xf32>
    %125 = arith.mulf %120, %124 : vector<8x64xf32>
    %126 = arith.truncf %125 : vector<8x64xf32> to vector<8x64xbf16>
    %127 = vector.extract_strided_slice %6 {offsets = [48, 0], sizes = [8, 256], strides = [1, 1]} : vector<64x256xf32> to vector<8x256xf32>
    %cst_21 = arith.constant dense<0.000000e+00> : vector<8x256xf32>
    %128 = tpu.matmul %126, %2, %cst_21 {dimension_numbers = #tpu.dot_dimension_numbers<[1], [0], [0], [1], [0, 0, 1, 1], [], []>} : vector<8x64xbf16>, vector<64x256xbf16>, vector<8x256xf32> -> vector<8x256xf32>
    %129 = arith.addf %127, %128 : vector<8x256xf32>
    %130 = arith.negf %129 : vector<8x256xf32>
    %131 = math.exp %130 : vector<8x256xf32>
    %cst_22 = arith.constant 1.000000e+00 : f32
    %132 = vector.broadcast %cst_22 : f32 to vector<8x256xf32>
    %133 = arith.addf %132, %131 : vector<8x256xf32>
    %134 = arith.divf %132, %133 : vector<8x256xf32>
    %135 = math.tanh %129 : vector<8x256xf32>
    %136 = vector.extract_strided_slice %134 {offsets = [0, 0], sizes = [8, 64], strides = [1, 1]} : vector<8x256xf32> to vector<8x64xf32>
    %137 = vector.extract_strided_slice %134 {offsets = [0, 64], sizes = [8, 64], strides = [1, 1]} : vector<8x256xf32> to vector<8x64xf32>
    %138 = vector.extract_strided_slice %135 {offsets = [0, 128], sizes = [8, 64], strides = [1, 1]} : vector<8x256xf32> to vector<8x64xf32>
    %139 = vector.extract_strided_slice %134 {offsets = [0, 192], sizes = [8, 64], strides = [1, 1]} : vector<8x256xf32> to vector<8x64xf32>
    %140 = arith.mulf %137, %123 : vector<8x64xf32>
    %141 = arith.mulf %136, %138 : vector<8x64xf32>
    %142 = arith.addf %140, %141 : vector<8x64xf32>
    %143 = math.tanh %142 : vector<8x64xf32>
    %144 = arith.mulf %139, %143 : vector<8x64xf32>
    %145 = arith.truncf %144 : vector<8x64xf32> to vector<8x64xbf16>
    %146 = vector.extract_strided_slice %6 {offsets = [56, 0], sizes = [8, 256], strides = [1, 1]} : vector<64x256xf32> to vector<8x256xf32>
    %cst_23 = arith.constant dense<0.000000e+00> : vector<8x256xf32>
    %147 = tpu.matmul %145, %2, %cst_23 {dimension_numbers = #tpu.dot_dimension_numbers<[1], [0], [0], [1], [0, 0, 1, 1], [], []>} : vector<8x64xbf16>, vector<64x256xbf16>, vector<8x256xf32> -> vector<8x256xf32>
    %148 = arith.addf %146, %147 : vector<8x256xf32>
    %149 = arith.negf %148 : vector<8x256xf32>
    %150 = math.exp %149 : vector<8x256xf32>
    %cst_24 = arith.constant 1.000000e+00 : f32
    %151 = vector.broadcast %cst_24 : f32 to vector<8x256xf32>
    %152 = arith.addf %151, %150 : vector<8x256xf32>
    %153 = arith.divf %151, %152 : vector<8x256xf32>
    %154 = math.tanh %148 : vector<8x256xf32>
    %155 = vector.extract_strided_slice %153 {offsets = [0, 0], sizes = [8, 64], strides = [1, 1]} : vector<8x256xf32> to vector<8x64xf32>
    %156 = vector.extract_strided_slice %153 {offsets = [0, 64], sizes = [8, 64], strides = [1, 1]} : vector<8x256xf32> to vector<8x64xf32>
    %157 = vector.extract_strided_slice %154 {offsets = [0, 128], sizes = [8, 64], strides = [1, 1]} : vector<8x256xf32> to vector<8x64xf32>
    %158 = vector.extract_strided_slice %153 {offsets = [0, 192], sizes = [8, 64], strides = [1, 1]} : vector<8x256xf32> to vector<8x64xf32>
    %159 = arith.mulf %156, %142 : vector<8x64xf32>
    %160 = arith.mulf %155, %157 : vector<8x64xf32>
    %161 = arith.addf %159, %160 : vector<8x64xf32>
    %162 = math.tanh %161 : vector<8x64xf32>
    %163 = arith.mulf %158, %162 : vector<8x64xf32>
    %164 = arith.truncf %163 : vector<8x64xf32> to vector<8x64xbf16>
    %165 = vector.extract_strided_slice %6 {offsets = [56, 0], sizes = [8, 256], strides = [1, 1]} : vector<64x256xf32> to vector<8x256xf32>
    %cst_25 = arith.constant dense<0.000000e+00> : vector<8x256xf32>
    %166 = tpu.matmul %164, %2, %cst_25 {dimension_numbers = #tpu.dot_dimension_numbers<[1], [0], [0], [1], [0, 0, 1, 1], [], []>} : vector<8x64xbf16>, vector<64x256xbf16>, vector<8x256xf32> -> vector<8x256xf32>
    %167 = arith.addf %165, %166 : vector<8x256xf32>
    %168 = arith.negf %167 : vector<8x256xf32>
    %169 = math.exp %168 : vector<8x256xf32>
    %cst_26 = arith.constant 1.000000e+00 : f32
    %170 = vector.broadcast %cst_26 : f32 to vector<8x256xf32>
    %171 = arith.addf %170, %169 : vector<8x256xf32>
    %172 = arith.divf %170, %171 : vector<8x256xf32>
    %173 = math.tanh %167 : vector<8x256xf32>
    %174 = vector.extract_strided_slice %172 {offsets = [0, 0], sizes = [8, 64], strides = [1, 1]} : vector<8x256xf32> to vector<8x64xf32>
    %175 = vector.extract_strided_slice %172 {offsets = [0, 64], sizes = [8, 64], strides = [1, 1]} : vector<8x256xf32> to vector<8x64xf32>
    %176 = vector.extract_strided_slice %173 {offsets = [0, 128], sizes = [8, 64], strides = [1, 1]} : vector<8x256xf32> to vector<8x64xf32>
    %177 = vector.extract_strided_slice %172 {offsets = [0, 192], sizes = [8, 64], strides = [1, 1]} : vector<8x256xf32> to vector<8x64xf32>
    %178 = arith.mulf %175, %161 : vector<8x64xf32>
    %179 = arith.mulf %174, %176 : vector<8x64xf32>
    %180 = arith.addf %178, %179 : vector<8x64xf32>
    %181 = math.tanh %180 : vector<8x64xf32>
    %182 = arith.mulf %177, %181 : vector<8x64xf32>
    %183 = arith.truncf %182 : vector<8x64xf32> to vector<8x64xbf16>
    %c0_27 = arith.constant 0 : index
    %c0_28 = arith.constant 0 : index
    %184 = vector.load %arg4[%c0_27, %c0_28] : memref<64x128xbf16, #tpu.memory_space<vmem>>, vector<64x128xbf16>
    %cst_29 = arith.constant dense<0.000000e+00> : vector<8x128xf32>
    %185 = tpu.matmul %183, %184, %cst_29 {dimension_numbers = #tpu.dot_dimension_numbers<[1], [0], [0], [1], [0, 0, 1, 1], [], []>} : vector<8x64xbf16>, vector<64x128xbf16>, vector<8x128xf32> -> vector<8x128xf32>
    %c0_30 = arith.constant 0 : index
    %c0_31 = arith.constant 0 : index
    %186 = vector.load %arg5[%c0_30, %c0_31] : memref<1x128xf32, #tpu.memory_space<vmem>>, vector<1x128xf32>
    %187 = vector.broadcast %186 : vector<1x128xf32> to vector<8x128xf32>
    %188 = arith.addf %185, %187 : vector<8x128xf32>
    %c0_32 = arith.constant 0 : index
    %c0_33 = arith.constant 0 : index
    %189 = vector.load %arg6[%c0_32, %c0_33] : memref<8x128xf32, #tpu.memory_space<vmem>>, vector<8x128xf32>
    tpu.vector_store %arg6[%c0_32, %c0_33], %188 {strides = array<i32>} : memref<8x128xf32, #tpu.memory_space<vmem>>, vector<8x128xf32>,
    return
  }
}

</mosaic_0001>

<bundles_post_ra>
// kernel: price_lstm_forward.1
= control target key start
LH: loop header
LB: loop body
LE: loop exit
PB: predicated region body
PF: predicated region fallthrough
CT: control target
= control target key end

     0   :  { %11 = vsyncpa [#allocation3], 0  ;;  %s1166_s21 = smov [#allocation2]   ;;  %s1460_s0 = inlined_call_operand.vmem [shape: bf16[64,4], index: 0, kind: input, shape index: {}]   ;;  %s1461_s1 = inlined_call_operand.vmem [shape: bf16[4,256], index: 1, kind: input, shape index: {}]   ;;  %s1462_s2 = inlined_call_operand.vmem [shape: f32[1,256], index: 2, kind: input, shape index: {}]   ;;  %s1463_s3 = inlined_call_operand.vmem [shape: bf16[64,256], index: 3, kind: input, shape index: {}]   ;;  %s1464_s4 = inlined_call_operand.vmem [shape: bf16[64,128], index: 4, kind: input, shape index: {}]   ;;  %s1465_s5 = inlined_call_operand.hbm [shape: f32[1,128], index: 5, kind: input, shape index: {}]   ;;  %s1466_s6 = inlined_call_operand.vmem [shape: f32[8,128], index: 6, kind: output, shape index: {}]  }
   0x1   :  { %s28_s22 = sshll.u32 %s1166_s21, 4  ;;  %s1142_s25 = scalar_lea.hbm %s1465_s5, 16  ;;  %s29_s22 = int_to_ptr.vmem [resolvable:$true] %s28_s22 }
   0x2   :  { %p1143_p0 = scmp.ne.s32.totalorder %s1465_s5, %s1142_s25  ;;  %p1146_p1 = scmp.lt.u32.totalorder %s1142_s25, %s1465_s5 }
   0x4   :  { %p1148_p2 = pnand %p1146_p1, %p1143_p0 }
   0x6   :  { %1151 = shalt.err (!%p1148_p2)
}
   0x7   :  { %s1152_s30 = scalar_lea.vmem %s29_s22, 16  ;;  %s1156_s7 = scalar_lea.vmem %s29_s22, 32 }
   0x8   :  { %p1153_p3 = scmp.ne.s32.totalorder %s29_s22, %s1152_s30  ;;  %p1157_p4 = scmp.lt.s32.totalorder %s29_s22, %s29_s22 }
   0x9   :  { %p1158_p5 = scmp.lt.s32.totalorder %s1156_s7, %s1152_s30 }
   0xb   :  { %p1159_p6 = por %p1158_p5, %p1157_p4 }
   0xd   :  { %p1160_p7 = pnand %p1159_p6, %p1153_p3 }
   0xf   :  { %1163 = shalt.err (!%p1160_p7)
}
  0x10   :  { %31 = dma.hbm_to_vmem [thread:$0]  %s1465_s5, 16, %s29_s22, [#allocation3]  }
  0x11   :  { %1164 = dma.done.wait [#allocation3], 16  }
  0x12   :  { %1165 = vsyncadd [#allocation3], 4294967280  ;;  %v1167_v0 = vmov 0   ;;  %vm109_vm0 = vcmask 1041408   ;;  %v1014_v4 = vld [vmem:[%s1460_s0] sm:$0xff]   ;;  %vm96_vm1 = vcmask 31744   ;;  %v57_v5 = vlaneseq }
  0x13   :  { %148 = vmatprep.mubr.bf16.mxu0 %v1167_v0  ;;  %309 = vmatprep.mubr.bf16.mxu1 %v1167_v0  ;;  %v946_v1 = vld.sshfl [vmem:[%s1461_s1] sm:$0x33 pattern:$0x76325410]  ;;  %s1168_s1 = smov 64   ;;  %vm273_vm5 = vcmask 523264  }
  0x14   :  { %v95_v2 = vcombine.high %v946_v1, %v946_v1  ;;  %v111_v3 = vsel %vm109_vm0, %v946_v1, 0  ;;  %v58_v6 = vshrl.u32 %v57_v5, 7  ;;  %v39_v8 = vld [vmem:[%s1462_s2] sm:$0x3]  ;;  %v1241_v21 = vand.u32 127, %v57_v5  ;;  %v1027_v1 = vld [vmem:[%s1460_s0 + $0x8] sm:$0xff]  }
  0x15   :  { %v1253_v27 = vld [vmem:[%s1463_s3 + $0x4] ss:$8 sps:$4 sm:$0xff]   ;;  %v1258_v28 = vld [vmem:[%s1463_s3] ss:$8 sps:$4 sm:$0xff]   ;;  %v1263_v29 = vld [vmem:[%s1463_s3 + $0x14] ss:$8 sps:$4 sm:$0xff]  }
  0x16   :  { %947 = vmatprep.subr.msk.bf16.mxu0 %vm109_vm0, %v95_v2  ;;  %v59_v7 = vsub.s32 0, %v58_v6  ;;  %v63_v16 = vsub.s32 1, %v58_v6  ;;  %vm191_vm2 = vcmp.lt.s32.totalorder %v1241_v21, 32  ;;  %277 = vmatprep.subr.bf16.mxu1 %v1253_v27  ;;  %v1271_v30 = vld [vmem:[%s1463_s3 + $0x10] ss:$8 sps:$4 sm:$0xff]   ;;  %vm1170_vm6 = vmmov 0  }
  0x17   :  { %117 = vmatpush1.bf16.msra.mxu0 %v111_v3  ;;  %vm215_vm3 = vmpackc.low %vm191_vm2, %vm191_vm2  ;;  %278 = vmatpush1.bf16.msra.mxu1 %v1258_v28  ;;  %v1278_v31 = vld [vmem:[%s1463_s3 + $0x24] ss:$8 sps:$4 sm:$0xff]   ;;  %v1285_v32 = vld [vmem:[%s1463_s3 + $0x20] ss:$8 sps:$4 sm:$0xff]  }
  0x18   :  { %v1231_v9 = vrot.slane %v39_v8, %v59_v7  ;;  %v1238_v17 = vrot.slane %v39_v8, %v63_v16  ;;  %v216_v24 = vsel %vm215_vm3, 65537, %v1167_v0  ;;  %425 = vmatprep.subr.bf16.mxu0 %v1253_v27  ;;  %279 = vmatprep.subr.bf16.mxu1 %v1263_v29  ;;  %v1292_v33 = vld [vmem:[%s1463_s3 + $0x34] ss:$8 sps:$4 sm:$0xff]   ;;  %v1299_v34 = vld [vmem:[%s1463_s3 + $0x30] ss:$8 sps:$4 sm:$0xff]  }
  0x19   :  { %v220_v26 = vrot.slane %v216_v24, %v59_v7 }
  0x1a   :  { %948 = vmatmul.mubr.msk.bf16.vlgmr.msra.gmra.mrb[0].mxu0 %vm96_vm1, %v1014_v4 }
  0x1b   :  { %158 = vmatprep.mubr.bf16.mxu0 %v1167_v0  ;;  %426 = vmatpush1.bf16.msra.mxu0 %v1258_v28 }
  0x1c   :  { %427 = vmatprep.subr.bf16.mxu0 %v1263_v29  ;;  %280 = vmatpush1.bf16.msra.mxu1 %v1271_v30 }
  0x1d   :  { %281 = vmatprep.subr.bf16.mxu1 %v1278_v31 }
  0x1f   :  { %428 = vmatpush1.bf16.msra.mxu0 %v1271_v30 }
  0x20   :  { %429 = vmatprep.subr.bf16.mxu0 %v1278_v31  ;;  %282 = vmatpush1.bf16.msra.mxu1 %v1285_v32 }
  0x21   :  { %283 = vmatprep.subr.bf16.mxu1 %v1292_v33 }
  0x22   :  { %949 = vmatmul.mubr.msk.bf16.gmra.mrb[4].mxu0 %vm96_vm1, %v1027_v1 }
  0x23   :  { %430 = vmatpush1.bf16.msra.mxu0 %v1285_v32  ;;  %168 = vmatprep.mubr.bf16.mxu0 %v1167_v0 }
  0x24   :  { %431 = vmatprep.subr.bf16.mxu0 %v1292_v33  ;;  %284 = vmatpush1.bf16.msra.mxu1 %v1299_v34 }
  0x25   :  { %353 = vmatprep.subr.bf16.mxu1 %v1253_v27 }
  0x27   :  { %432 = vmatpush1.bf16.msra.mxu0 %v1299_v34 }
  0x28   :  { %569 = vmatprep.subr.bf16.mxu0 %v1253_v27 }
  0xed   :  { %v150_v10 = vpop.f32.mrb[0].mxu0 }
  0xee   :  { %v151_v11 = vadd.f32 %v150_v10, %v1231_v9  ;;  %v152_v12 = vpop.f32.mrb[1].mxu0 }
  0xef   :  { %v1234_v13 = vpop.f32.mrb[2].mxu0  ;;  %v153_v18 = vadd.f32 %v152_v12, %v1238_v17 }
  0xf0   :  { %v952_v14 = vmul.f32 -1.442695, %v151_v11  ;;  %v1236_v15 = vpop.f32.mrb[3].mxu0  ;;  %v155_v50 = vadd.f32 %v1234_v13, %v1231_v9 }
  0xf1   :  { %v953_v35 = vmul.f32 -1.442695, %v153_v18  ;;  %v157_v51 = vadd.f32 %v1236_v15, %v1238_v17 }
  0xf2   :  { %1034 = vpow2.f32 %v952_v14 }
  0xf3   :  { %1036 = vtanh.f32 %v153_v18 }
  0xf5   :  { %v160_v14 = vpop.f32.mrb[4].mxu0 }
  0xf6   :  { %v162_v15 = vpop.f32.mrb[5].mxu0 }
  0xf7   :  { %v1334_v16 = vpop.f32.mrb[6].mxu0  ;;  %v163_v21 = vadd.f32 %v162_v15, %v1238_v17 }
  0xf8   :  { %v1336_v18 = vpop.f32.mrb[7].mxu0 }
  0xf9   :  { %v167_v1 = vadd.f32 %v1336_v18, %v1238_v17 }
  0xfc   :  { %v1035_v19 = vpop.eup %1034 }
  0xfd   :  { %v198_v20 = vadd.f32 1.0, %v1035_v19  ;;  %v1037_v22 = vpop.eup %1036 }
  0xff   :  { %1038 = vrcp.f32 %v198_v20  ;;  %v161_v20 = vadd.f32 %v160_v14, %v1231_v9 }
 0x100   :  { %1040 = vpow2.f32 %v953_v35 }
 0x109   :  { %v1039_v23 = vpop.eup %1038 }
 0x10a   :  { %v206_v25 = vmul.f32 %v1039_v23, %v1037_v22  ;;  %v1041_v36 = vpop.eup %1040  ;;  %v205_v38 = vmul.f32 0.0, %v1039_v23 }
 0x10b   :  { %v199_v37 = vadd.f32 1.0, %v1041_v36 }
 0x10c   :  { %208 = vrot.lane.b32.xlu0 %v206_v25, %s1168_s1 }
 0x10d   :  { %1042 = vrcp.f32 %v199_v37 }
 0x110   :  { %221 = vrot.lane.b32.xlu0 %v220_v26, %s1168_s1 }
 0x117   :  { %v1043_v41 = vpop.eup %1042 }
 0x17e   :  { %v209_v39 = vpop.permute.xlu0 %208 }
 0x17f   :  { %v211_v40 = vadd.f32 %v209_v39, %v205_v38 }
 0x181   :  { %1044 = vtanh.f32 %v211_v40 }
 0x182   :  { %v222_v42 = vpop.permute.xlu0 %221 }
 0x183   :  { %vm223_vm4 = vcmp.ne.s16.totalorder %v222_v42, 0  ;;  %v1028_v42 = vld [vmem:[%s1460_s0 + $0x10] sm:$0xff]  }
 0x184   :  { %950 = vmatmul.mubr.msk.bf16.gmra.mrb[8].mxu0 %vm96_vm1, %v1028_v42 }
 0x185   :  { %178 = vmatprep.mubr.bf16.mxu0 %v1167_v0 }
 0x18b   :  { %v1045_v43 = vpop.eup %1044 }
 0x18c   :  { %v213_v44 = vmul.f32 %v1045_v43, %v1043_v41  ;;  %v1029_v43 = vld [vmem:[%s1460_s0 + $0x18] sm:$0xff]  }
 0x18d   :  { %951 = vmatmul.mubr.msk.bf16.gmra.mrb[12].mxu0 %vm96_vm1, %v1029_v43 }
 0x18e   :  { %v214_v45 = vpack.c.bf16 %v213_v44, %v213_v44  ;;  %457 = vmatprep.mubr.bf16.mxu0 %v1167_v0 }
 0x190   :  { %v224_v46 = vsel %vm223_vm4, %v214_v45, 0 }
 0x191   :  { %231 = vrot.lane.b32.xlu1 %v224_v46, %s1168_s1 }
 0x195   :  { %226 = vrot.lane.b32.xlu1 %v211_v40, %s1168_s1 }
 0x203   :  { %v232_v47 = vpop.permute.xlu1 %231 }
 0x204   :  { %962 = vmatmul.mubr.msk.bf16.vlgmr.msra.gmra.mrb[0].mxu1 %vm273_vm5, %v232_v47 }
 0x205   :  { %354 = vmatpush1.bf16.msra.mxu1 %v1258_v28  ;;  %385 = vmatprep.mubr.bf16.mxu1 %v1167_v0 }
 0x206   :  { %355 = vmatprep.subr.bf16.mxu1 %v1263_v29 }
 0x207   :  { %v227_v48 = vpop.permute.xlu1 %226 }
 0x208   :  { %v229_v49 = vsel %vm191_vm2, %v227_v48, 0.0 }
 0x209   :  { %334 = vrot.lane.b32.xlu0 %v229_v49, %s1168_s1  ;;  %356 = vmatpush1.bf16.msra.mxu1 %v1271_v30 }
 0x20a   :  { %357 = vmatprep.subr.bf16.mxu1 %v1278_v31 }
 0x20d   :  { %358 = vmatpush1.bf16.msra.mxu1 %v1285_v32 }
 0x20e   :  { %359 = vmatprep.subr.bf16.mxu1 %v1292_v33 }
 0x211   :  { %360 = vmatpush1.bf16.msra.mxu1 %v1299_v34 }
 0x212   :  { %497 = vmatprep.subr.bf16.mxu1 %v1253_v27 }
 0x27b   :  { %v335_v4 = vpop.permute.xlu0 %334 }
 0x2d7   :  { %v311_v52 = vpop.f32.mrb[0].mxu1 }
 0x2d8   :  { %v318_v53 = vadd.f32 %v311_v52, %v155_v50  ;;  %v313_v54 = vpop.f32.mrb[1].mxu1 }
 0x2d9   :  { %v319_v55 = vadd.f32 %v313_v54, %v157_v51  ;;  %v315_v56 = vpop.f32.mrb[2].mxu1  ;;  %v170_v54 = vpop.f32.mrb[8].mxu0 }
 0x2da   :  { %v963_v57 = vmul.f32 -1.442695, %v318_v53  ;;  %v316_v58 = vpop.f32.mrb[3].mxu1 }
 0x2db   :  { %v964_v2 = vmul.f32 -1.442695, %v319_v55 }
 0x2dc   :  { %1046 = vpow2.f32 %v963_v57 }
 0x2dd   :  { %1048 = vtanh.f32 %v319_v55  ;;  %v172_v55 = vpop.f32.mrb[9].mxu0 }
 0x2de   :  { %v1362_v56 = vpop.f32.mrb[10].mxu0 }
 0x2df   :  { %v1364_v57 = vpop.f32.mrb[11].mxu0 }
 0x2e0   :  { %v1366_v58 = vpop.f32.mrb[12].mxu0 }
 0x2e6   :  { %v1047_v59 = vpop.eup %1046 }
 0x2e7   :  { %v326_v60 = vadd.f32 1.0, %v1047_v59  ;;  %v1049_v61 = vpop.eup %1048  ;;  %v1368_v59 = vpop.f32.mrb[13].mxu0 }
 0x2e9   :  { %1050 = vrcp.f32 %v326_v60  ;;  %v1370_v60 = vpop.f32.mrb[14].mxu0 }
 0x2ea   :  { %1052 = vpow2.f32 %v964_v2 }
 0x2f3   :  { %v1051_v62 = vpop.eup %1050 }
 0x2f4   :  { %v338_v63 = vmul.f32 %v1051_v62, %v1049_v61  ;;  %v1053_v3 = vpop.eup %1052  ;;  %v337_v6 = vmul.f32 %v1051_v62, %v335_v4  ;;  %v1372_v61 = vpop.f32.mrb[15].mxu0 }
 0x2f5   :  { %v327_v5 = vadd.f32 1.0, %v1053_v3 }
 0x2f6   :  { %340 = vrot.lane.b32.xlu1 %v338_v63, %s1168_s1  ;;  %v165_v63 = vadd.f32 %v1334_v16, %v1231_v9 }
 0x2f7   :  { %1054 = vrcp.f32 %v327_v5 }
 0x301   :  { %v1055_v10 = vpop.eup %1054 }
 0x368   :  { %v341_v7 = vpop.permute.xlu1 %340 }
 0x369   :  { %v343_v8 = vadd.f32 %v341_v7, %v337_v6 }
 0x36b   :  { %1056 = vtanh.f32 %v343_v8 }
 0x375   :  { %v1057_v11 = vpop.eup %1056 }
 0x376   :  { %v345_v12 = vmul.f32 %v1057_v11, %v1055_v10 }
 0x378   :  { %v346_v13 = vpack.c.bf16 %v345_v12, %v345_v12 }
 0x37a   :  { %348 = vrot.lane.b32.xlu0 %v346_v13, %s1168_s1 }
 0x3ec   :  { %v349_v19 = vpop.permute.xlu0 %348 }
 0x3ed   :  { %965 = vmatmul.mubr.msk.bf16.vlgmr.msra.gmra.mrb[4].mxu1 %vm273_vm5, %v349_v19 }
 0x3ee   :  { %498 = vmatpush1.bf16.msra.mxu1 %v1258_v28  ;;  %529 = vmatprep.mubr.bf16.mxu1 %v1167_v0 }
 0x3ef   :  { %499 = vmatprep.subr.bf16.mxu1 %v1263_v29 }
 0x3f2   :  { %500 = vmatpush1.bf16.msra.mxu1 %v1271_v30 }
 0x3f3   :  { %501 = vmatprep.subr.bf16.mxu1 %v1278_v31 }
 0x3f6   :  { %502 = vmatpush1.bf16.msra.mxu1 %v1285_v32 }
 0x3f7   :  { %503 = vmatprep.subr.bf16.mxu1 %v1292_v33 }
 0x3fa   :  { %504 = vmatpush1.bf16.msra.mxu1 %v1299_v34 }
 0x3fb   :  { %641 = vmatprep.subr.bf16.mxu1 %v1253_v27 }
 0x4c0   :  { %v387_v22 = vpop.f32.mrb[4].mxu1 }
 0x4c1   :  { %v394_v23 = vadd.f32 %v387_v22, %v161_v20  ;;  %v389_v24 = vpop.f32.mrb[5].mxu1 }
 0x4c2   :  { %v395_v25 = vadd.f32 %v389_v24, %v163_v21  ;;  %v391_v26 = vpop.f32.mrb[6].mxu1 }
 0x4c3   :  { %v966_v35 = vmul.f32 -1.442695, %v394_v23  ;;  %v392_v36 = vpop.f32.mrb[7].mxu1 }
 0x4c4   :  { %v967_v44 = vmul.f32 -1.442695, %v395_v25  ;;  %v173_v36 = vadd.f32 %v172_v55, %v1238_v17 }
 0x4c5   :  { %1058 = vpow2.f32 %v966_v35  ;;  %v171_v35 = vadd.f32 %v170_v54, %v1231_v9 }
 0x4c6   :  { %1060 = vtanh.f32 %v395_v25 }
 0x4cf   :  { %v1059_v37 = vpop.eup %1058 }
 0x4d0   :  { %v402_v38 = vadd.f32 1.0, %v1059_v37  ;;  %v1061_v39 = vpop.eup %1060 }
 0x4d2   :  { %1062 = vrcp.f32 %v402_v38 }
 0x4d3   :  { %1064 = vpow2.f32 %v967_v44 }
 0x4dc   :  { %v1063_v40 = vpop.eup %1062 }
 0x4dd   :  { %v410_v41 = vmul.f32 %v1063_v40, %v1061_v39  ;;  %v1065_v45 = vpop.eup %1064  ;;  %v409_v47 = vmul.f32 %v1063_v40, %v343_v8 }
 0x4de   :  { %v403_v46 = vadd.f32 1.0, %v1065_v45 }
 0x4df   :  { %412 = vrot.lane.b32.xlu1 %v410_v41, %s1168_s1 }
 0x4e0   :  { %1066 = vrcp.f32 %v403_v46 }
 0x4ea   :  { %v1067_v50 = vpop.eup %1066 }
 0x551   :  { %v413_v48 = vpop.permute.xlu1 %412 }
 0x552   :  { %v415_v49 = vadd.f32 %v413_v48, %v409_v47 }
 0x554   :  { %1068 = vtanh.f32 %v415_v49 }
 0x55e   :  { %v1069_v51 = vpop.eup %1068 }
 0x55f   :  { %v417_v52 = vmul.f32 %v1069_v51, %v1067_v50 }
 0x561   :  { %v418_v53 = vpack.c.bf16 %v417_v52, %v417_v52 }
 0x563   :  { %420 = vrot.lane.b32.xlu0 %v418_v53, %s1168_s1 }
 0x5d5   :  { %v421_v62 = vpop.permute.xlu0 %420 }
 0x5d6   :  { %968 = vmatmul.mubr.msk.bf16.vlgmr.msra.gmra.mrb[16].mxu0 %vm273_vm5, %v421_v62 }
 0x5d7   :  { %570 = vmatpush1.bf16.msra.mxu0 %v1258_v28  ;;  %601 = vmatprep.mubr.bf16.mxu0 %v1167_v0 }
 0x5d8   :  { %571 = vmatprep.subr.bf16.mxu0 %v1263_v29 }
 0x5db   :  { %572 = vmatpush1.bf16.msra.mxu0 %v1271_v30 }
 0x5dc   :  { %573 = vmatprep.subr.bf16.mxu0 %v1278_v31 }
 0x5df   :  { %574 = vmatpush1.bf16.msra.mxu0 %v1285_v32 }
 0x5e0   :  { %575 = vmatprep.subr.bf16.mxu0 %v1292_v33 }
 0x5e3   :  { %576 = vmatpush1.bf16.msra.mxu0 %v1299_v34 }
 0x5e4   :  { %713 = vmatprep.subr.bf16.mxu0 %v1253_v27 }
 0x6a9   :  { %v459_v2 = vpop.f32.mrb[16].mxu0 }
 0x6aa   :  { %v466_v3 = vadd.f32 %v459_v2, %v165_v63  ;;  %v461_v4 = vpop.f32.mrb[17].mxu0  ;;  %v175_v2 = vadd.f32 %v1362_v56, %v1231_v9 }
 0x6ab   :  { %v467_v5 = vadd.f32 %v461_v4, %v167_v1  ;;  %v463_v6 = vpop.f32.mrb[18].mxu0 }
 0x6ac   :  { %v969_v7 = vmul.f32 -1.442695, %v466_v3  ;;  %v464_v8 = vpop.f32.mrb[19].mxu0  ;;  %v177_v3 = vadd.f32 %v1364_v57, %v1238_v17 }
 0x6ad   :  { %v970_v15 = vmul.f32 -1.442695, %v467_v5 }
 0x6ae   :  { %1070 = vpow2.f32 %v969_v7 }
 0x6af   :  { %1072 = vtanh.f32 %v467_v5 }
 0x6b8   :  { %v1071_v10 = vpop.eup %1070 }
 0x6b9   :  { %v474_v11 = vadd.f32 1.0, %v1071_v10  ;;  %v1073_v12 = vpop.eup %1072 }
 0x6bb   :  { %1074 = vrcp.f32 %v474_v11 }
 0x6bc   :  { %1076 = vpow2.f32 %v970_v15 }
 0x6c5   :  { %v1075_v13 = vpop.eup %1074 }
 0x6c6   :  { %v482_v14 = vmul.f32 %v1075_v13, %v1073_v12  ;;  %v1077_v16 = vpop.eup %1076  ;;  %v481_v19 = vmul.f32 %v1075_v13, %v415_v49 }
 0x6c7   :  { %v475_v18 = vadd.f32 1.0, %v1077_v16 }
 0x6c8   :  { %484 = vrot.lane.b32.xlu1 %v482_v14, %s1168_s1 }
 0x6c9   :  { %1078 = vrcp.f32 %v475_v18 }
 0x6d3   :  { %v1079_v22 = vpop.eup %1078 }
 0x73a   :  { %v485_v20 = vpop.permute.xlu1 %484 }
 0x73b   :  { %v487_v21 = vadd.f32 %v485_v20, %v481_v19 }
 0x73d   :  { %1080 = vtanh.f32 %v487_v21 }
 0x747   :  { %v1081_v23 = vpop.eup %1080 }
 0x748   :  { %v489_v24 = vmul.f32 %v1081_v23, %v1079_v22 }
 0x74a   :  { %v490_v25 = vpack.c.bf16 %v489_v24, %v489_v24 }
 0x74c   :  { %492 = vrot.lane.b32.xlu0 %v490_v25, %s1168_s1 }
 0x7be   :  { %v493_v26 = vpop.permute.xlu0 %492 }
 0x7bf   :  { %971 = vmatmul.mubr.msk.bf16.vlgmr.msra.gmra.mrb[8].mxu1 %vm273_vm5, %v493_v26 }
 0x7c0   :  { %642 = vmatpush1.bf16.msra.mxu1 %v1258_v28  ;;  %673 = vmatprep.mubr.bf16.mxu1 %v1167_v0 }
 0x7c1   :  { %643 = vmatprep.subr.bf16.mxu1 %v1263_v29 }
 0x7c4   :  { %644 = vmatpush1.bf16.msra.mxu1 %v1271_v30 }
 0x7c5   :  { %645 = vmatprep.subr.bf16.mxu1 %v1278_v31 }
 0x7c8   :  { %646 = vmatpush1.bf16.msra.mxu1 %v1285_v32 }
 0x7c9   :  { %647 = vmatprep.subr.bf16.mxu1 %v1292_v33 }
 0x7cc   :  { %648 = vmatpush1.bf16.msra.mxu1 %v1299_v34 }
 0x7cd   :  { %785 = vmatprep.subr.bf16.mxu1 %v1253_v27 }
 0x892   :  { %v531_v37 = vpop.f32.mrb[8].mxu1 }
 0x893   :  { %v538_v38 = vadd.f32 %v531_v37, %v171_v35  ;;  %v533_v39 = vpop.f32.mrb[9].mxu1  ;;  %v181_v35 = vadd.f32 %v1366_v58, %v1231_v9 }
 0x894   :  { %v539_v40 = vadd.f32 %v533_v39, %v173_v36  ;;  %v535_v41 = vpop.f32.mrb[10].mxu1 }
 0x895   :  { %v972_v42 = vmul.f32 -1.442695, %v538_v38  ;;  %v536_v43 = vpop.f32.mrb[11].mxu1 }
 0x896   :  { %v973_v27 = vmul.f32 -1.442695, %v539_v40 }
 0x897   :  { %1082 = vpow2.f32 %v972_v42 }
 0x898   :  { %1084 = vtanh.f32 %v539_v40 }
 0x8a1   :  { %v1083_v44 = vpop.eup %1082 }
 0x8a2   :  { %v546_v45 = vadd.f32 1.0, %v1083_v44  ;;  %v1085_v46 = vpop.eup %1084 }
 0x8a4   :  { %1086 = vrcp.f32 %v546_v45 }
 0x8a5   :  { %1088 = vpow2.f32 %v973_v27 }
 0x8ae   :  { %v1087_v47 = vpop.eup %1086 }
 0x8af   :  { %v554_v48 = vmul.f32 %v1087_v47, %v1085_v46  ;;  %v1089_v49 = vpop.eup %1088  ;;  %v553_v51 = vmul.f32 %v1087_v47, %v487_v21 }
 0x8b0   :  { %v547_v50 = vadd.f32 1.0, %v1089_v49  ;;  %v185_v49 = vadd.f32 %v1370_v60, %v1231_v9 }
 0x8b1   :  { %556 = vrot.lane.b32.xlu1 %v554_v48, %s1168_s1 }
 0x8b2   :  { %1090 = vrcp.f32 %v547_v50 }
 0x8bc   :  { %v1091_v54 = vpop.eup %1090 }
 0x923   :  { %v557_v52 = vpop.permute.xlu1 %556 }
 0x924   :  { %v559_v53 = vadd.f32 %v557_v52, %v553_v51 }
 0x926   :  { %1092 = vtanh.f32 %v559_v53 }
 0x930   :  { %v1093_v55 = vpop.eup %1092 }
 0x931   :  { %v561_v62 = vmul.f32 %v1093_v55, %v1091_v54 }
 0x933   :  { %v562_v63 = vpack.c.bf16 %v561_v62, %v561_v62  ;;  %v187_v62 = vadd.f32 %v1372_v61, %v1238_v17 }
 0x935   :  { %564 = vrot.lane.b32.xlu0 %v562_v63, %s1168_s1 }
 0x9a7   :  { %v565_v1 = vpop.permute.xlu0 %564 }
 0x9a8   :  { %974 = vmatmul.mubr.msk.bf16.vlgmr.msra.gmra.mrb[20].mxu0 %vm273_vm5, %v565_v1 }
 0x9a9   :  { %714 = vmatpush1.bf16.msra.mxu0 %v1258_v28  ;;  %745 = vmatprep.mubr.bf16.mxu0 %v1167_v0 }
 0x9aa   :  { %715 = vmatprep.subr.bf16.mxu0 %v1263_v29 }
 0x9ad   :  { %716 = vmatpush1.bf16.msra.mxu0 %v1271_v30 }
 0x9ae   :  { %717 = vmatprep.subr.bf16.mxu0 %v1278_v31 }
 0x9b1   :  { %718 = vmatpush1.bf16.msra.mxu0 %v1285_v32 }
 0x9b2   :  { %719 = vmatprep.subr.bf16.mxu0 %v1292_v33 }
 0x9b5   :  { %720 = vmatpush1.bf16.msra.mxu0 %v1299_v34 }
 0xa7b   :  { %v603_v4 = vpop.f32.mrb[20].mxu0 }
 0xa7c   :  { %v610_v5 = vadd.f32 %v603_v4, %v175_v2  ;;  %v605_v6 = vpop.f32.mrb[21].mxu0 }
 0xa7d   :  { %v611_v7 = vadd.f32 %v605_v6, %v177_v3  ;;  %v607_v8 = vpop.f32.mrb[22].mxu0 }
 0xa7e   :  { %v975_v10 = vmul.f32 -1.442695, %v610_v5  ;;  %v608_v11 = vpop.f32.mrb[23].mxu0 }
 0xa7f   :  { %v976_v56 = vmul.f32 -1.442695, %v611_v7 }
 0xa80   :  { %1094 = vpow2.f32 %v975_v10 }
 0xa81   :  { %1096 = vtanh.f32 %v611_v7 }
 0xa8a   :  { %v1095_v12 = vpop.eup %1094 }
 0xa8b   :  { %v618_v13 = vadd.f32 1.0, %v1095_v12  ;;  %v1097_v14 = vpop.eup %1096 }
 0xa8d   :  { %1098 = vrcp.f32 %v618_v13 }
 0xa8e   :  { %1100 = vpow2.f32 %v976_v56 }
 0xa97   :  { %v1099_v15 = vpop.eup %1098 }
 0xa98   :  { %v626_v16 = vmul.f32 %v1099_v15, %v1097_v14  ;;  %v1101_v57 = vpop.eup %1100  ;;  %v625_v19 = vmul.f32 %v1099_v15, %v559_v53 }
 0xa99   :  { %v619_v18 = vadd.f32 1.0, %v1101_v57 }
 0xa9a   :  { %628 = vrot.lane.b32.xlu1 %v626_v16, %s1168_s1 }
 0xa9b   :  { %1102 = vrcp.f32 %v619_v18 }
 0xaa5   :  { %v1103_v22 = vpop.eup %1102 }
 0xb0c   :  { %v629_v20 = vpop.permute.xlu1 %628 }
 0xb0d   :  { %v631_v21 = vadd.f32 %v629_v20, %v625_v19 }
 0xb0f   :  { %1104 = vtanh.f32 %v631_v21 }
 0xb19   :  { %v1105_v23 = vpop.eup %1104 }
 0xb1a   :  { %v633_v24 = vmul.f32 %v1105_v23, %v1103_v22 }
 0xb1c   :  { %v634_v25 = vpack.c.bf16 %v633_v24, %v633_v24 }
 0xb1e   :  { %636 = vrot.lane.b32.xlu0 %v634_v25, %s1168_s1  ;;  %v1030_v25 = vld [vmem:[%s1464_s4] sm:$0xff]  }
 0xb90   :  { %v637_v26 = vpop.permute.xlu0 %636 }
 0xb91   :  { %977 = vmatmul.mubr.msk.bf16.vlgmr.msra.gmra.mrb[12].mxu1 %vm273_vm5, %v637_v26  ;;  %v1169_v26 = vmov 0.0  }
 0xb92   :  { %786 = vmatpush1.bf16.msra.mxu1 %v1258_v28  ;;  %817 = vmatprep.mubr.bf16.mxu1 %v1167_v0  ;;  %v183_v28 = vadd.f32 %v1368_v59, %v1238_v17 }
 0xb93   :  { %787 = vmatprep.subr.bf16.mxu1 %v1263_v29  ;;  %997 = vmatprep.subr.bf16.mxu0 %v1169_v26 }
 0xb96   :  { %788 = vmatpush1.bf16.msra.mxu1 %v1271_v30 }
 0xb97   :  { %789 = vmatprep.subr.bf16.mxu1 %v1278_v31 }
 0xb9a   :  { %790 = vmatpush1.bf16.msra.mxu1 %v1285_v32 }
 0xb9b   :  { %791 = vmatprep.subr.bf16.mxu1 %v1292_v33 }
 0xb9e   :  { %792 = vmatpush1.bf16.msra.mxu1 %v1299_v34 }
 0xc64   :  { %v675_v36 = vpop.f32.mrb[12].mxu1 }
 0xc65   :  { %v682_v0 = vadd.f32 %v675_v36, %v181_v35  ;;  %v677_v37 = vpop.f32.mrb[13].mxu1  ;;  %v1031_v35 = vld [vmem:[%s1464_s4 + $0x8] sm:$0xff]   ;;  %v1033_v36 = vld [vmem:[%s1464_s4 + $0x18] sm:$0xff]  }
 0xc66   :  { %v683_v29 = vadd.f32 %v677_v37, %v183_v28  ;;  %v679_v38 = vpop.f32.mrb[14].mxu1  ;;  %v1032_v28 = vld [vmem:[%s1464_s4 + $0x10] sm:$0xff]  }
 0xc67   :  { %v978_v30 = vmul.f32 -1.442695, %v682_v0  ;;  %v680_v39 = vpop.f32.mrb[15].mxu1 }
 0xc68   :  { %v979_v58 = vmul.f32 -1.442695, %v683_v29 }
 0xc69   :  { %1106 = vpow2.f32 %v978_v30 }
 0xc6a   :  { %1108 = vtanh.f32 %v683_v29 }
 0xc73   :  { %v1107_v31 = vpop.eup %1106 }
 0xc74   :  { %v690_v32 = vadd.f32 1.0, %v1107_v31  ;;  %v1109_v33 = vpop.eup %1108 }
 0xc76   :  { %1110 = vrcp.f32 %v690_v32 }
 0xc77   :  { %1112 = vpow2.f32 %v979_v58  ;;  %v986_v58 = vld [vmem:[#allocation2] ss:$0 sm:$0xff] }
 0xc80   :  { %v1111_v34 = vpop.eup %1110 }
 0xc81   :  { %v698_v40 = vmul.f32 %v1111_v34, %v1109_v33  ;;  %v1113_v59 = vpop.eup %1112  ;;  %v697_v42 = vmul.f32 %v1111_v34, %v631_v21 }
 0xc82   :  { %v691_v41 = vadd.f32 1.0, %v1113_v59 }
 0xc83   :  { %700 = vrot.lane.b32.xlu1 %v698_v40, %s1168_s1 }
 0xc84   :  { %1114 = vrcp.f32 %v691_v41 }
 0xc8e   :  { %v1115_v45 = vpop.eup %1114 }
 0xcf5   :  { %v701_v43 = vpop.permute.xlu1 %700 }
 0xcf6   :  { %v703_v44 = vadd.f32 %v701_v43, %v697_v42 }
 0xcf8   :  { %1116 = vtanh.f32 %v703_v44 }
 0xd02   :  { %v1117_v46 = vpop.eup %1116 }
 0xd03   :  { %v705_v47 = vmul.f32 %v1117_v46, %v1115_v45 }
 0xd05   :  { %v706_v48 = vpack.c.bf16 %v705_v47, %v705_v47 }
 0xd07   :  { %708 = vrot.lane.b32.xlu0 %v706_v48, %s1168_s1 }
 0xd79   :  { %v709_v27 = vpop.permute.xlu0 %708 }
 0xd7a   :  { %980 = vmatmul.mubr.msk.bf16.vlgmr.msra.gmra.mrb[24].mxu0 %vm273_vm5, %v709_v27 }
 0xd7b   :  { %1005 = vmatprep.mubr.msk.bf16.mxu0 %vm1170_vm6, %v1169_v26  ;;  %998 = vmatpush3.bf16.msra.mxu0 %v1030_v25 }
 0xd7c   :  { %999 = vmatprep.subr.bf16.mxu0 %v1169_v26 }
 0xd7f   :  { %1000 = vmatpush3.bf16.msra.mxu0 %v1031_v35 }
 0xd80   :  { %1001 = vmatprep.subr.bf16.mxu0 %v1169_v26 }
 0xd83   :  { %1002 = vmatpush3.bf16.msra.mxu0 %v1032_v28 }
 0xd84   :  { %1003 = vmatprep.subr.bf16.mxu0 %v1169_v26 }
 0xd87   :  { %1004 = vmatpush3.bf16.msra.mxu0 %v1033_v36 }
 0xe4d   :  { %v747_v50 = vpop.f32.mrb[24].mxu0 }
 0xe4e   :  { %v754_v51 = vadd.f32 %v747_v50, %v185_v49  ;;  %v749_v52 = vpop.f32.mrb[25].mxu0 }
 0xe4f   :  { %v751_v53 = vpop.f32.mrb[26].mxu0  ;;  %v755_v63 = vadd.f32 %v749_v52, %v187_v62 }
 0xe50   :  { %v981_v54 = vmul.f32 -1.442695, %v754_v51  ;;  %v752_v55 = vpop.f32.mrb[27].mxu0 }
 0xe51   :  { %v982_v9 = vmul.f32 -1.442695, %v755_v63 }
 0xe52   :  { %1118 = vpow2.f32 %v981_v54 }
 0xe53   :  { %1120 = vtanh.f32 %v755_v63 }
 0xe5c   :  { %v1119_v1 = vpop.eup %1118 }
 0xe5d   :  { %v762_v2 = vadd.f32 1.0, %v1119_v1  ;;  %v1121_v3 = vpop.eup %1120 }
 0xe5f   :  { %1122 = vrcp.f32 %v762_v2 }
 0xe60   :  { %1124 = vpow2.f32 %v982_v9 }
 0xe69   :  { %v1123_v4 = vpop.eup %1122 }
 0xe6a   :  { %v770_v5 = vmul.f32 %v1123_v4, %v1121_v3  ;;  %v1125_v60 = vpop.eup %1124  ;;  %v769_v7 = vmul.f32 %v1123_v4, %v703_v44 }
 0xe6b   :  { %v763_v6 = vadd.f32 1.0, %v1125_v60 }
 0xe6c   :  { %772 = vrot.lane.b32.xlu1 %v770_v5, %s1168_s1 }
 0xe6d   :  { %1126 = vrcp.f32 %v763_v6 }
 0xe77   :  { %v1127_v17 = vpop.eup %1126 }
 0xede   :  { %v773_v8 = vpop.permute.xlu1 %772 }
 0xedf   :  { %v775_v10 = vadd.f32 %v773_v8, %v769_v7 }
 0xee1   :  { %1128 = vtanh.f32 %v775_v10 }
 0xeeb   :  { %v1129_v61 = vpop.eup %1128 }
 0xeec   :  { %v777_v11 = vmul.f32 %v1129_v61, %v1127_v17 }
 0xeee   :  { %v778_v12 = vpack.c.bf16 %v777_v11, %v777_v11 }
 0xef0   :  { %780 = vrot.lane.b32.xlu0 %v778_v12, %s1168_s1 }
 0xf62   :  { %v781_v13 = vpop.permute.xlu0 %780 }
 0xf63   :  { %983 = vmatmul.mubr.msk.bf16.vlgmr.msra.gmra.mrb[16].mxu1 %vm273_vm5, %v781_v13 }
0x1036   :  { %v819_v14 = vpop.f32.mrb[16].mxu1 }
0x1037   :  { %v826_v15 = vadd.f32 %v819_v14, %v185_v49  ;;  %v821_v16 = vpop.f32.mrb[17].mxu1 }
0x1038   :  { %v823_v56 = vpop.f32.mrb[18].mxu1  ;;  %v827_v19 = vadd.f32 %v821_v16, %v187_v62 }
0x1039   :  { %v984_v57 = vmul.f32 -1.442695, %v826_v15  ;;  %v824_v18 = vpop.f32.mrb[19].mxu1 }
0x103a   :  { %v985_v0 = vmul.f32 -1.442695, %v827_v19 }
0x103b   :  { %1130 = vpow2.f32 %v984_v57 }
0x103c   :  { %1132 = vtanh.f32 %v827_v19 }
0x1045   :  { %v1131_v20 = vpop.eup %1130 }
0x1046   :  { %v834_v21 = vadd.f32 1.0, %v1131_v20  ;;  %v1133_v22 = vpop.eup %1132 }
0x1048   :  { %1134 = vrcp.f32 %v834_v21 }
0x1049   :  { %1136 = vpow2.f32 %v985_v0 }
0x1052   :  { %v1135_v23 = vpop.eup %1134 }
0x1053   :  { %v842_v24 = vmul.f32 %v1135_v23, %v1133_v22  ;;  %v1137_v37 = vpop.eup %1136  ;;  %v841_v38 = vmul.f32 %v1135_v23, %v775_v10 }
0x1054   :  { %v835_v29 = vadd.f32 1.0, %v1137_v37 }
0x1055   :  { %844 = vrot.lane.b32.xlu1 %v842_v24, %s1168_s1 }
0x1056   :  { %1138 = vrcp.f32 %v835_v29 }
0x1060   :  { %v1139_v31 = vpop.eup %1138 }
0x10c7   :  { %v845_v30 = vpop.permute.xlu1 %844 }
0x10c8   :  { %v847_v39 = vadd.f32 %v845_v30, %v841_v38 }
0x10ca   :  { %1140 = vtanh.f32 %v847_v39 }
0x10d4   :  { %v1141_v32 = vpop.eup %1140 }
0x10d5   :  { %v849_v33 = vmul.f32 %v1141_v32, %v1139_v31 }
0x10d7   :  { %v850_v34 = vpack.c.bf16 %v849_v33, %v849_v33 }
0x10d9   :  { %867 = vrot.lane.b32.xlu0 %v850_v34, %s1168_s1 }
0x114b   :  { %v868_v40 = vpop.permute.xlu0 %867 }
0x114c   :  { %1006 = vmatmul.mubr.msk.bf16.vlgmr.msra.gmra.mrb[28].mxu0 %vm273_vm5, %v868_v40 }
0x121f   :  { %v930_v59 = vpop.f32.mrb[28].mxu0 }
0x1220   :  { %v931_v41 = vadd.f32 %v986_v58, %v930_v59  ;;  %v1007_v42 = vpop.f32.mrb[29].mxu0 }
0x1221   :  { %v933_v43 = vpop.f32.mrb[30].mxu0 }
0x1222   :  { %936 = vst [vmem:[%s1466_s6] sm:$0xff] %v931_v41  ;;  %v1008_v44 = vpop.f32.mrb[31].mxu0 }
0x1223   :  { %941 = vsyncpa [#allocation3], 1 }

</bundles_post_ra>
